<compile_context>
chip_gen: v5e
topology: v5e:2x2
jax: 0.10.0
libtpu: 0.0.40
codegen_flags: <defaults>
</compile_context>

<pallas_src>
import functools
import math

import jax
import jax.numpy as jnp
from jax.experimental import pallas as pl
from jax.experimental.pallas import tpu as pltpu

EPS = 1e-5  # torch.nn.LayerNorm default eps


def _avgpool_classifier_kernel(x_ref, w_ref, b_ref, out_ref, acc_ref,
                               *, seq_len, inv_d, tile_s):
    """One (TB, TS, D) tile of tokens per call; pooled sum carried in acc_ref.

    x_ref:   (TB, TS, D)   token tile
    w_ref:   (D,  C_pad)   classifier weight with gamma folded in
    b_ref:   (1,  C_pad)   classifier bias with beta folded in
    out_ref: (TB, C_pad)   logits (written only on the last S step)
    acc_ref: (TB, D) f32   running sum over S of normalized tokens
    """
    si = pl.program_id(1)

    @pl.when(si == 0)
    def _():
        acc_ref[...] = jnp.zeros_like(acc_ref)

    x = x_ref[...].astype(jnp.float32)                       # (TB, TS, D)

    # Ragged-S handling with NO HBM-side padding copy: rows whose global
    # sequence index >= seq_len hold unspecified garbage (the HBM block is
    # clipped; the VMEM remainder is stale).  Zero them BEFORE the statistics
    # so NaN/Inf can never leak through mean/var.  Static no-op when S % TS == 0.
    if seq_len % tile_s != 0:
        row = jax.lax.broadcasted_iota(jnp.int32, x.shape, 1)
        x = jnp.where(si * tile_s + row < seq_len, x, 0.0)

    # One-pass LayerNorm statistics over the feature (lane) axis, f32 accumulation.
    # (If profiling shows XLU/VALU binds instead of HBM, these two lane reductions
    #  can be moved to the idle MXU via x2 @ ones(D,1); left as jnp.sum since the
    #  kernel is HBM-bound at these shapes.)
    sx = jnp.sum(x, axis=-1, keepdims=True)                  # (TB, TS, 1)
    sxx = jnp.sum(x * x, axis=-1, keepdims=True)             # (TB, TS, 1)
    mean = sx * inv_d
    var = jnp.maximum(sxx * inv_d - mean * mean, 0.0)        # clamp cancellation
    inv = jax.lax.rsqrt(var + EPS)

    # gamma/beta live in w_ref/b_ref; masked rows have x == 0 -> mean == 0 -> xn == 0,
    # so they contribute nothing to the pooled sum.
    xn = (x - mean) * inv                                     # (TB, TS, D)
    acc_ref[...] += jnp.sum(xn, axis=1)

    @pl.when(si == pl.num_programs(1) - 1)
    def _():
        pooled = acc_ref[...] * (1.0 / seq_len)               # divide by TRUE seq len
        logits = jnp.dot(pooled, w_ref[...],
                         preferred_element_type=jnp.float32) + b_ref[...]
        out_ref[...] = logits.astype(out_ref.dtype)           # lane-dense (TB, C_pad)


def avgpool_classifier(x, gamma, beta, w, b, *, tile_s=None, tile_b=None):
    """Fused LayerNorm + token-average pooling + linear classifier.

    x:     (B, S, D)  activations (f32 or bf16; normalized in f32 in-kernel)
    gamma: (D,)       LayerNorm weight
    beta:  (D,)       LayerNorm bias
    w:     (C, D)     linear weight (torch layout)
    b:     (C,)       linear bias
    returns (B, C) float32 logits
    """
    B, S, D = x.shape
    C = w.shape[0]

    # ---- fold the LayerNorm affine into the classifier (pooling + linear are
    # linear maps):  logits = mean_S(xhat) @ (gamma[:,None]*W^T) + (beta @ W^T + b)
    w_eff = gamma[:, None].astype(jnp.float32) * w.T.astype(jnp.float32)      # (D, C)
    b_eff = (beta.astype(jnp.float32) @ w.T.astype(jnp.float32)
             + b.astype(jnp.float32))                                         # (C,)

    # ---- lane-dense output: pad classes up to a multiple of 128 (tiny, cheap).
    C_pad = ((C + 127) // 128) * 128
    w_eff = jnp.pad(w_eff, ((0, 0), (0, C_pad - C)))
    b_eff = jnp.pad(b_eff, (0, C_pad - C))[None, :]                           # (1, C_pad)

    # ---- generation-aware VMEM budgets --------------------------------------
    try:
        vmem_cap = getattr(pltpu.get_tpu_info(), "vmem_capacity_bytes",
                           64 * 1024 * 1024)
    except Exception:
        vmem_cap = 64 * 1024 * 1024                     # conservative default
    if vmem_cap >= 96 * 1024 * 1024:                    # v5e / v6e: 128 MiB VMEM
        x_tile_budget = 8 * 1024 * 1024                 # f32-equivalent bytes / tile
        vmem_limit = 64 * 1024 * 1024
    else:                                               # v7x: 64 MiB per TC
        x_tile_budget = 4 * 1024 * 1024
        vmem_limit = 44 * 1024 * 1024

    # ---- batch tile: output sublane dim must be a multiple of 8 (or full B).
    # Keep >= 2 batch programs whenever B >= 16 so v7x megacore sharding engages;
    # raise TB for large B to amortize per-batch epilogue work.
    if tile_b is not None:
        TB = tile_b
    elif B < 8:
        TB = B
    elif B >= 256:
        TB = 32
    elif B >= 64:
        TB = 16
    else:
        TB = 8

    # ---- sequence tile from the f32-equivalent byte budget ------------------
    budget_rows = max(8, x_tile_budget // max(1, TB * D * 4))
    budget_rows = max(8, (budget_rows // 8) * 8)
    if tile_s is not None:
        TS = tile_s
    elif S <= 8:
        TS = S                                           # full-dim (ragged-safe)
    else:
        TS = min((S // 8) * 8, budget_rows)              # multiple of 8, <= S

    grid = (pl.cdiv(B, TB), pl.cdiv(S, TS))

    itemsize = jnp.dtype(x.dtype).itemsize
    cost = pl.CostEstimate(
        flops=8 * B * S * D + 2 * B * D * C_pad,
        transcendentals=B * S,                           # rsqrt per token
        bytes_accessed=(B * S * D * itemsize
                        + D * C_pad * 4 + C_pad * 4
                        + B * C_pad * 4),
    )

    kernel = functools.partial(_avgpool_classifier_kernel,
                               seq_len=S, inv_d=1.0 / D, tile_s=TS)

    def build(single_buffer_weights):
        wb_kw = ({"pipeline_mode": pl.Buffered(1)}
                 if single_buffer_weights else {})
        return pl.pallas_call(
            kernel,
            out_shape=jax.ShapeDtypeStruct((B, C_pad), jnp.float32),
            grid_spec=pltpu.PrefetchScalarGridSpec(
                num_scalar_prefetch=0,
                grid=grid,
                in_specs=[
                    pl.BlockSpec((TB, TS, D), lambda bi, si: (bi, si, 0)),
                    pl.BlockSpec((D, C_pad), lambda bi, si: (0, 0), **wb_kw),
                    pl.BlockSpec((1, C_pad), lambda bi, si: (0, 0), **wb_kw),
                ],
                out_specs=pl.BlockSpec((TB, C_pad), lambda bi, si: (bi, 0)),
                scratch_shapes=[pltpu.VMEM((TB, D), jnp.float32)],
            ),
            compiler_params=pltpu.CompilerParams(
                dimension_semantics=("parallel", "arbitrary"),
                vmem_limit_bytes=vmem_limit,
            ),
            cost_estimate=cost,
        )

    try:
        out = build(True)(x, w_eff, b_eff)
    except Exception:
        # pl.Buffered(1) single-buffering of the grid-invariant w/b operands is a
        # pure VMEM-headroom optimization; fall back to default double buffering.
        out = build(False)(x, w_eff, b_eff)

    return out[:, :C]


def reference(x, gamma, beta, w, b):
    """Pure-JAX reference matching the PyTorch forward semantics."""
    x = x.astype(jnp.float32)
    mean = jnp.mean(x, axis=-1, keepdims=True)
    var = jnp.mean((x - mean) ** 2, axis=-1, keepdims=True)
    xn = (x - mean) / jnp.sqrt(var + EPS) * gamma + beta
    pooled = jnp.mean(xn, axis=1)
    return pooled @ w.T + b


if __name__ == "__main__":
    # --- config 1: small shapes consistent with the module -------------------
    B, S, D, C = 2, 8, 32, 4
    kx, kw, kb = jax.random.split(jax.random.PRNGKey(0), 3)
    x = jax.random.normal(kx, (B, S, D), dtype=jnp.float32)
    gamma = jnp.ones((D,), jnp.float32)       # nn.LayerNorm default weight
    beta = jnp.zeros((D,), jnp.float32)       # nn.LayerNorm default bias
    w = jax.random.normal(kw, (C, D), jnp.float32) * (1.0 / math.sqrt(D))
    b = jax.random.normal(kb, (C,), jnp.float32) * 0.01

    logits = avgpool_classifier(x, gamma, beta, w, b)
    jax.block_until_ready(logits)
    ref = reference(x, gamma, beta, w, b)
    assert logits.shape == (B, C)
    assert jnp.allclose(logits, ref, atol=1e-4, rtol=1e-4), "mismatch vs reference (cfg 1)"

    # --- config 2: ragged B (10 % 8 != 0), ragged S (50 % 16 != 0), non-trivial
    #     gamma/beta fold, class-lane padding, multi-step S reduction ----------
    B2, S2, D2, C2 = 10, 50, 128, 5
    k1, k2, k3, k4, k5 = jax.random.split(jax.random.PRNGKey(1), 5)
    x2 = jax.random.normal(k1, (B2, S2, D2), jnp.float32)
    g2 = 1.0 + 0.1 * jax.random.normal(k2, (D2,), jnp.float32)
    be2 = 0.1 * jax.random.normal(k3, (D2,), jnp.float32)
    w2 = jax.random.normal(k4, (C2, D2), jnp.float32) * (1.0 / math.sqrt(D2))
    b2 = 0.01 * jax.random.normal(k5, (C2,), jnp.float32)

    out2 = avgpool_classifier(x2, g2, be2, w2, b2, tile_s=16)   # 4 S-steps, ragged tail
    jax.block_until_ready(out2)
    ref2 = reference(x2, g2, be2, w2, b2)
    assert out2.shape == (B2, C2)
    assert jnp.allclose(out2, ref2, atol=1e-4, rtol=1e-4), "mismatch vs reference (cfg 2)"

    print("KERNEL_OK")
</pallas_src>

<mosaic_0001>
module attributes {stable_mosaic.version = 11 : i64} {
  func.func @_avgpool_classifier_kernel(%arg0: i32, %arg1: i32, %arg2: memref<2x8x32xf32, #tpu.memory_space<vmem>>, %arg3: memref<32x128xf32, #tpu.memory_space<vmem>>, %arg4: memref<1x128xf32, #tpu.memory_space<vmem>>, %arg5: memref<2x128xf32, #tpu.memory_space<vmem>>, %arg6: memref<2x32xf32, #tpu.memory_space<vmem>>) attributes {dimension_semantics = [#tpu.dimension_semantics<parallel>, #tpu.dimension_semantics<arbitrary>], iteration_bounds = array<i64: 1, 1>, scalar_prefetch = 0 : i64, scratch_operands = 1 : i64, tpu.core_type = #tpu.core_type<tc>, window_params = [{transform_indices = @transform_0, window_bounds = array<i64: 2, 8, 32>}, {pipeline_mode = #tpu.pipeline_mode<synchronous>, transform_indices = @transform_1, window_bounds = array<i64: 32, 128>}, {pipeline_mode = #tpu.pipeline_mode<synchronous>, transform_indices = @transform_2, window_bounds = array<i64: 1, 128>}, {transform_indices = @transform_3, window_bounds = array<i64: 2, 128>}]} {
    %c0_i32 = arith.constant 0 : i32
    %0 = arith.cmpi eq, %arg1, %c0_i32 : i32
    %1 = arith.extui %0 : i1 to i32
    %c0_i32_0 = arith.constant 0 : i32
    %2 = arith.cmpi ne, %1, %c0_i32_0 : i32
    scf.if %2 {
      %cst_15 = arith.constant 0.000000e+00 : f32
      %31 = vector.broadcast %cst_15 : f32 to vector<2x32xf32>
      %c0_16 = arith.constant 0 : index
      %c0_17 = arith.constant 0 : index
      %32 = vector.load %arg6[%c0_16, %c0_17] : memref<2x32xf32, #tpu.memory_space<vmem>>, vector<2x32xf32>
      tpu.vector_store %arg6[%c0_16, %c0_17], %31 {strides = array<i32>} : memref<2x32xf32, #tpu.memory_space<vmem>>, vector<2x32xf32>,
    } else {
    }
    %c0 = arith.constant 0 : index
    %c0_1 = arith.constant 0 : index
    %c0_2 = arith.constant 0 : index
    %3 = vector.load %arg2[%c0, %c0_1, %c0_2] : memref<2x8x32xf32, #tpu.memory_space<vmem>>, vector<2x8x32xf32>
    %cst = arith.constant dense<0.000000e+00> : vector<2x8xf32>
    %4 = vector.multi_reduction <add>, %3, %cst [2] : vector<2x8x32xf32> to vector<2x8xf32>
    %5 = vector.shape_cast %4 : vector<2x8xf32> to vector<2x8x1xf32>
    %6 = arith.mulf %3, %3 : vector<2x8x32xf32>
    %cst_3 = arith.constant dense<0.000000e+00> : vector<2x8xf32>
    %7 = vector.multi_reduction <add>, %6, %cst_3 [2] : vector<2x8x32xf32> to vector<2x8xf32>
    %8 = vector.shape_cast %7 : vector<2x8xf32> to vector<2x8x1xf32>
    %cst_4 = arith.constant 3.125000e-02 : f32
    %9 = vector.broadcast %cst_4 : f32 to vector<2x8x1xf32>
    %10 = arith.mulf %5, %9 : vector<2x8x1xf32>
    %cst_5 = arith.constant 3.125000e-02 : f32
    %11 = vector.broadcast %cst_5 : f32 to vector<2x8x1xf32>
    %12 = arith.mulf %8, %11 : vector<2x8x1xf32>
    %13 = arith.mulf %10, %10 : vector<2x8x1xf32>
    %14 = arith.subf %12, %13 : vector<2x8x1xf32>
    %cst_6 = arith.constant 0.000000e+00 : f32
    %15 = vector.broadcast %cst_6 : f32 to vector<2x8x1xf32>
    %16 = arith.maximumf %14, %15 : vector<2x8x1xf32>
    %cst_7 = arith.constant 9.99999974E-6 : f32
    %17 = vector.broadcast %cst_7 : f32 to vector<2x8x1xf32>
    %18 = arith.addf %16, %17 : vector<2x8x1xf32>
    %19 = math.rsqrt %18 : vector<2x8x1xf32>
    %20 = vector.broadcast %10 : vector<2x8x1xf32> to vector<2x8x32xf32>
    %21 = arith.subf %3, %20 : vector<2x8x32xf32>
    %22 = vector.broadcast %19 : vector<2x8x1xf32> to vector<2x8x32xf32>
    %23 = arith.mulf %21, %22 : vector<2x8x32xf32>
    %c0_8 = arith.constant 0 : index
    %c0_9 = arith.constant 0 : index
    %24 = vector.load %arg6[%c0_8, %c0_9] : memref<2x32xf32, #tpu.memory_space<vmem>>, vector<2x32xf32>
    %cst_10 = arith.constant dense<0.000000e+00> : vector<2x32xf32>
    %25 = vector.multi_reduction <add>, %23, %cst_10 [1] : vector<2x8x32xf32> to vector<2x32xf32>
    %26 = arith.addf %24, %25 : vector<2x32xf32>
    %c0_11 = arith.constant 0 : index
    %c0_12 = arith.constant 0 : index
    %27 = vector.load %arg6[%c0_11, %c0_12] : memref<2x32xf32, #tpu.memory_space<vmem>>, vector<2x32xf32>
    tpu.vector_store %arg6[%c0_11, %c0_12], %26 {strides = array<i32>} : memref<2x32xf32, #tpu.memory_space<vmem>>, vector<2x32xf32>,
    %c0_i32_13 = arith.constant 0 : i32
    %28 = arith.cmpi eq, %arg1, %c0_i32_13 : i32
    %29 = arith.extui %28 : i1 to i32
    %c0_i32_14 = arith.constant 0 : i32
    %30 = arith.cmpi ne, %29, %c0_i32_14 : i32
    scf.if %30 {
      %c0_15 = arith.constant 0 : index
      %c0_16 = arith.constant 0 : index
      %31 = vector.load %arg6[%c0_15, %c0_16] : memref<2x32xf32, #tpu.memory_space<vmem>>, vector<2x32xf32>
      %cst_17 = arith.constant 1.250000e-01 : f32
      %32 = vector.broadcast %cst_17 : f32 to vector<2x32xf32>
      %33 = arith.mulf %31, %32 : vector<2x32xf32>
      %c0_18 = arith.constant 0 : index
      %c0_19 = arith.constant 0 : index
      %34 = vector.load %arg3[%c0_18, %c0_19] : memref<32x128xf32, #tpu.memory_space<vmem>>, vector<32x128xf32>
      %cst_20 = arith.constant dense<0.000000e+00> : vector<2x128xf32>
      %35 = tpu.matmul %33, %34, %cst_20 {dimension_numbers = #tpu.dot_dimension_numbers<[1], [0], [0], [1], [0, 0, 1, 1], [], []>} : vector<2x32xf32>, vector<32x128xf32>, vector<2x128xf32> -> vector<2x128xf32>
      %c0_21 = arith.constant 0 : index
      %c0_22 = arith.constant 0 : index
      %36 = vector.load %arg4[%c0_21, %c0_22] : memref<1x128xf32, #tpu.memory_space<vmem>>, vector<1x128xf32>
      %37 = vector.broadcast %36 : vector<1x128xf32> to vector<2x128xf32>
      %38 = arith.addf %35, %37 : vector<2x128xf32>
      %c0_23 = arith.constant 0 : index
      %c0_24 = arith.constant 0 : index
      %39 = vector.load %arg5[%c0_23, %c0_24] : memref<2x128xf32, #tpu.memory_space<vmem>>, vector<2x128xf32>
      tpu.vector_store %arg5[%c0_23, %c0_24], %38 {strides = array<i32>} : memref<2x128xf32, #tpu.memory_space<vmem>>, vector<2x128xf32>,
    } else {
    }
    return
  }
  func.func @transform_0(%arg0: i32, %arg1: i32) -> (i32, i32, i32) {
    %c0_i32 = arith.constant 0 : i32
    %c0_i32_0 = arith.constant 0 : i32
    return %arg0, %arg1, %c0_i32 : i32, i32, i32
  }
  func.func @transform_1(%arg0: i32, %arg1: i32) -> (i32, i32) {
    %c0_i32 = arith.constant 0 : i32
    %c0_i32_0 = arith.constant 0 : i32
    %c0_i32_1 = arith.constant 0 : i32
    return %c0_i32, %c0_i32_0 : i32, i32
  }
  func.func @transform_2(%arg0: i32, %arg1: i32) -> (i32, i32) {
    %c0_i32 = arith.constant 0 : i32
    %c0_i32_0 = arith.constant 0 : i32
    %c0_i32_1 = arith.constant 0 : i32
    return %c0_i32, %c0_i32_0 : i32, i32
  }
  func.func @transform_3(%arg0: i32, %arg1: i32) -> (i32, i32) {
    %c0_i32 = arith.constant 0 : i32
    %c0_i32_0 = arith.constant 0 : i32
    return %arg0, %c0_i32 : i32, i32
  }
}

module attributes {stable_mosaic.version = 11 : i64} {
  func.func @_avgpool_classifier_kernel(%arg0: i32, %arg1: i32, %arg2: memref<2x8x32xf32, #tpu.memory_space<vmem>>, %arg3: memref<32x128xf32, #tpu.memory_space<vmem>>, %arg4: memref<1x128xf32, #tpu.memory_space<vmem>>, %arg5: memref<2x128xf32, #tpu.memory_space<vmem>>, %arg6: memref<2x32xf32, #tpu.memory_space<vmem>>) attributes {dimension_semantics = [#tpu.dimension_semantics<parallel>, #tpu.dimension_semantics<arbitrary>], iteration_bounds = array<i64: 1, 1>, scalar_prefetch = 0 : i64, scratch_operands = 1 : i64, tpu.core_type = #tpu.core_type<tc>, window_params = [{transform_indices = @transform_0, window_bounds = array<i64: 2, 8, 32>}, {pipeline_mode = #tpu.pipeline_mode<synchronous>, transform_indices = @transform_1, window_bounds = array<i64: 32, 128>}, {pipeline_mode = #tpu.pipeline_mode<synchronous>, transform_indices = @transform_2, window_bounds = array<i64: 1, 128>}, {transform_indices = @transform_3, window_bounds = array<i64: 2, 128>}]} {
    %c0_i32 = arith.constant 0 : i32
    %0 = arith.cmpi eq, %arg1, %c0_i32 : i32
    %1 = arith.extui %0 : i1 to i32
    %c0_i32_0 = arith.constant 0 : i32
    %2 = arith.cmpi ne, %1, %c0_i32_0 : i32
    scf.if %2 {
      %cst_15 = arith.constant 0.000000e+00 : f32
      %31 = vector.broadcast %cst_15 : f32 to vector<2x32xf32>
      %c0_16 = arith.constant 0 : index
      %c0_17 = arith.constant 0 : index
      %32 = vector.load %arg6[%c0_16, %c0_17] : memref<2x32xf32, #tpu.memory_space<vmem>>, vector<2x32xf32>
      tpu.vector_store %arg6[%c0_16, %c0_17], %31 {strides = array<i32>} : memref<2x32xf32, #tpu.memory_space<vmem>>, vector<2x32xf32>,
    } else {
    }
    %c0 = arith.constant 0 : index
    %c0_1 = arith.constant 0 : index
    %c0_2 = arith.constant 0 : index
    %3 = vector.load %arg2[%c0, %c0_1, %c0_2] : memref<2x8x32xf32, #tpu.memory_space<vmem>>, vector<2x8x32xf32>
    %cst = arith.constant dense<0.000000e+00> : vector<2x8xf32>
    %4 = vector.multi_reduction <add>, %3, %cst [2] : vector<2x8x32xf32> to vector<2x8xf32>
    %5 = vector.shape_cast %4 : vector<2x8xf32> to vector<2x8x1xf32>
    %6 = arith.mulf %3, %3 : vector<2x8x32xf32>
    %cst_3 = arith.constant dense<0.000000e+00> : vector<2x8xf32>
    %7 = vector.multi_reduction <add>, %6, %cst_3 [2] : vector<2x8x32xf32> to vector<2x8xf32>
    %8 = vector.shape_cast %7 : vector<2x8xf32> to vector<2x8x1xf32>
    %cst_4 = arith.constant 3.125000e-02 : f32
    %9 = vector.broadcast %cst_4 : f32 to vector<2x8x1xf32>
    %10 = arith.mulf %5, %9 : vector<2x8x1xf32>
    %cst_5 = arith.constant 3.125000e-02 : f32
    %11 = vector.broadcast %cst_5 : f32 to vector<2x8x1xf32>
    %12 = arith.mulf %8, %11 : vector<2x8x1xf32>
    %13 = arith.mulf %10, %10 : vector<2x8x1xf32>
    %14 = arith.subf %12, %13 : vector<2x8x1xf32>
    %cst_6 = arith.constant 0.000000e+00 : f32
    %15 = vector.broadcast %cst_6 : f32 to vector<2x8x1xf32>
    %16 = arith.maximumf %14, %15 : vector<2x8x1xf32>
    %cst_7 = arith.constant 9.99999974E-6 : f32
    %17 = vector.broadcast %cst_7 : f32 to vector<2x8x1xf32>
    %18 = arith.addf %16, %17 : vector<2x8x1xf32>
    %19 = math.rsqrt %18 : vector<2x8x1xf32>
    %20 = vector.broadcast %10 : vector<2x8x1xf32> to vector<2x8x32xf32>
    %21 = arith.subf %3, %20 : vector<2x8x32xf32>
    %22 = vector.broadcast %19 : vector<2x8x1xf32> to vector<2x8x32xf32>
    %23 = arith.mulf %21, %22 : vector<2x8x32xf32>
    %c0_8 = arith.constant 0 : index
    %c0_9 = arith.constant 0 : index
    %24 = vector.load %arg6[%c0_8, %c0_9] : memref<2x32xf32, #tpu.memory_space<vmem>>, vector<2x32xf32>
    %cst_10 = arith.constant dense<0.000000e+00> : vector<2x32xf32>
    %25 = vector.multi_reduction <add>, %23, %cst_10 [1] : vector<2x8x32xf32> to vector<2x32xf32>
    %26 = arith.addf %24, %25 : vector<2x32xf32>
    %c0_11 = arith.constant 0 : index
    %c0_12 = arith.constant 0 : index
    %27 = vector.load %arg6[%c0_11, %c0_12] : memref<2x32xf32, #tpu.memory_space<vmem>>, vector<2x32xf32>
    tpu.vector_store %arg6[%c0_11, %c0_12], %26 {strides = array<i32>} : memref<2x32xf32, #tpu.memory_space<vmem>>, vector<2x32xf32>,
    %c0_i32_13 = arith.constant 0 : i32
    %28 = arith.cmpi eq, %arg1, %c0_i32_13 : i32
    %29 = arith.extui %28 : i1 to i32
    %c0_i32_14 = arith.constant 0 : i32
    %30 = arith.cmpi ne, %29, %c0_i32_14 : i32
    scf.if %30 {
      %c0_15 = arith.constant 0 : index
      %c0_16 = arith.constant 0 : index
      %31 = vector.load %arg6[%c0_15, %c0_16] : memref<2x32xf32, #tpu.memory_space<vmem>>, vector<2x32xf32>
      %cst_17 = arith.constant 1.250000e-01 : f32
      %32 = vector.broadcast %cst_17 : f32 to vector<2x32xf32>
      %33 = arith.mulf %31, %32 : vector<2x32xf32>
      %c0_18 = arith.constant 0 : index
      %c0_19 = arith.constant 0 : index
      %34 = vector.load %arg3[%c0_18, %c0_19] : memref<32x128xf32, #tpu.memory_space<vmem>>, vector<32x128xf32>
      %cst_20 = arith.constant dense<0.000000e+00> : vector<2x128xf32>
      %35 = tpu.matmul %33, %34, %cst_20 {dimension_numbers = #tpu.dot_dimension_numbers<[1], [0], [0], [1], [0, 0, 1, 1], [], []>} : vector<2x32xf32>, vector<32x128xf32>, vector<2x128xf32> -> vector<2x128xf32>
      %c0_21 = arith.constant 0 : index
      %c0_22 = arith.constant 0 : index
      %36 = vector.load %arg4[%c0_21, %c0_22] : memref<1x128xf32, #tpu.memory_space<vmem>>, vector<1x128xf32>
      %37 = vector.broadcast %36 : vector<1x128xf32> to vector<2x128xf32>
      %38 = arith.addf %35, %37 : vector<2x128xf32>
      %c0_23 = arith.constant 0 : index
      %c0_24 = arith.constant 0 : index
      %39 = vector.load %arg5[%c0_23, %c0_24] : memref<2x128xf32, #tpu.memory_space<vmem>>, vector<2x128xf32>
      tpu.vector_store %arg5[%c0_23, %c0_24], %38 {strides = array<i32>} : memref<2x128xf32, #tpu.memory_space<vmem>>, vector<2x128xf32>,
    } else {
    }
    return
  }
  func.func @transform_0(%arg0: i32, %arg1: i32) -> (i32, i32, i32) {
    %c0_i32 = arith.constant 0 : i32
    %c0_i32_0 = arith.constant 0 : i32
    return %arg0, %arg1, %c0_i32 : i32, i32, i32
  }
  func.func @transform_1(%arg0: i32, %arg1: i32) -> (i32, i32) {
    %c0_i32 = arith.constant 0 : i32
    %c0_i32_0 = arith.constant 0 : i32
    %c0_i32_1 = arith.constant 0 : i32
    return %c0_i32, %c0_i32_0 : i32, i32
  }
  func.func @transform_2(%arg0: i32, %arg1: i32) -> (i32, i32) {
    %c0_i32 = arith.constant 0 : i32
    %c0_i32_0 = arith.constant 0 : i32
    %c0_i32_1 = arith.constant 0 : i32
    return %c0_i32, %c0_i32_0 : i32, i32
  }
  func.func @transform_3(%arg0: i32, %arg1: i32) -> (i32, i32) {
    %c0_i32 = arith.constant 0 : i32
    %c0_i32_0 = arith.constant 0 : i32
    return %arg0, %c0_i32 : i32, i32
  }
}

</mosaic_0001>

<bundles_post_ra>
// kernel: tpu_custom_call.1
= control target key start
LH: loop header
LB: loop body
LE: loop exit
PB: predicated region body
PF: predicated region fallthrough
CT: control target
= control target key end

     0   :  { %8 = vsyncpa [#allocation4], 0  ;;  %s327_s0 = inlined_call_operand.hbm [shape: f32[2,8,32], index: 0, kind: input, shape index: {}]   ;;  %s328_s1 = inlined_call_operand.hbm [shape: f32[32,128], index: 1, kind: input, shape index: {}]   ;;  %s329_s2 = inlined_call_operand.vmem [shape: f32[1,128], index: 2, kind: input, shape index: {}]   ;;  %s330_s3 = inlined_call_operand.hbm [shape: f32[2,128], index: 3, kind: output, shape index: {}]  }
   0x1   :  { %9 = vsyncpa [#allocation7], 0 }
   0x2   :  { %10 = vsyncpa [#allocation5], 0  ;;  %s15_s14 = sshll.u32 %s327_s0, 4  ;;  %s274_s15 = smov [#allocation3]   ;;  %s16_s14 = int_to_ptr.hbm [resolvable:$true] %s15_s14 }
   0x3   :  { %s17_s16 = sshll.u32 %s274_s15, 4  ;;  %s28_s19 = sshll.u32 %s328_s1, 4  ;;  %s18_s16 = int_to_ptr.vmem [resolvable:$true] %s17_s16  ;;  %s29_s19 = int_to_ptr.hbm [resolvable:$true] %s28_s19 }
   0x4   :  { %s275_s20 = smov 128   ;;  %s276_s21 = smov 8  }
   0x5   :  { %23 = dma.hbm_to_vmem [thread:$0]  %s16_s14, 256, %s18_s16, [#allocation4], %s275_s20, %s275_s20, %s276_s21  }
   0x6   :  { %s277_s22 = smov [#allocation6]  }
   0x7   :  { %s30_s23 = sshll.u32 %s277_s22, 4  ;;  %s31_s23 = int_to_ptr.vmem [resolvable:$true] %s30_s23 }
   0x8   :  { %36 = dma.hbm_to_vmem [thread:$0]  %s29_s19, 512, %s31_s23, [#allocation7], %s275_s20, %s275_s20, %s276_s21  }
   0x9   :  { %268 = dma.done.wait [#allocation4], 256  }
   0xa   :  { %269 = vsyncadd [#allocation4], 4294967040 }
   0xb   :  { %270 = dma.done.wait [#allocation7], 512  }
   0xc   :  { %271 = vsyncadd [#allocation7], 4294966784  ;;  %vm55_vm0 = vcmask 261120   ;;  %v53_v0 = vld [vmem:[#allocation3] sm:$0xff]  ;;  %v307_v3 = vld [vmem:[#allocation3 + $0x8] sm:$0xff]  ;;  %vm51_vm1 = vcmask 254976  }
   0xd   :  { %v56_v1 = vsel %vm55_vm0, %v53_v0, 0.0  ;;  %v62_v2 = vmul.f32 %v53_v0, %v53_v0  ;;  %v63_v5 = vmul.f32 %v307_v3, %v307_v3  ;;  %v59_v6 = vsel %vm55_vm0, %v307_v3, 0.0  ;;  %v137_v30 = vld [vmem:[#allocation6 + $0x18] sm:$0xff]  ;;  %v136_v31 = vld [vmem:[#allocation6 + $0x10] sm:$0xff]  ;;  %v135_v34 = vld [vmem:[#allocation6 + $0x8] sm:$0xff]  ;;  %s279_s24 = smov [#allocation8]  }
   0xe   :  { %57 = vadd.xlane.f32.xlu0 %v56_v1  ;;  %v278_v20 = vmov 0.0   ;;  %157 = vmatpush.msra.mxu0 %v137_v30  ;;  %v134_v38 = vld [vmem:[#allocation6] sm:$0xff]  ;;  %vm123_vm8 = vcmask 1041409   ;;  %s171_s25 = sshll.u32 %s279_s24, 4  ;;  %s173_s28 = sshll.u32 %s330_s3, 4  ;;  %s172_s25 = int_to_ptr.vmem [resolvable:$true] %s171_s25  ;;  %s174_s28 = int_to_ptr.hbm [resolvable:$true] %s173_s28 }
   0xf   :  { %v64_v4 = vsel %vm55_vm0, %v62_v2, 0.0  ;;  %v67_v7 = vsel %vm55_vm0, %v63_v5, 0.0  ;;  %52 = vst.msk [vmem:[#allocation2] sm:$0x3] %vm51_vm1, %v278_v20  ;;  %v191_v2 = vld [vmem:[%s329_s2] ss:$0 sm:$0xff] }
  0x10   :  { %65 = vadd.xlane.f32.xlu1 %v64_v4  ;;  %158 = vmatpush.msra.mxu0 %v136_v31 }
  0x12   :  { %159 = vmatpush.msra.mxu0 %v135_v34 }
  0x14   :  { %160 = vmatpush.msra.mxu0 %v134_v38 }
  0x16   :  { %60 = vadd.xlane.f32.xlu0 %v59_v6  ;;  %v106_v60 = vld [vmem:[#allocation2] sm:$0x3] }
  0x18   :  { %68 = vadd.xlane.f32.xlu1 %v67_v7 }
  0x81   :  { %v58_v8 = vpop.xlane.xlu0 %57 }
  0x82   :  { %v70_v9 = vmul.f32 0.03125, %v58_v8 }
  0x83   :  { %v66_v10 = vpop.xlane.xlu1 %65 }
  0x84   :  { %v74_v11 = vmul.f32 %v70_v9, %v70_v9  ;;  %v72_v12 = vmul.f32 0.03125, %v66_v10  ;;  %v102_v35 = vsub.f32 %v53_v0, %v70_v9 }
  0x86   :  { %v76_v13 = vsub.f32 %v72_v12, %v74_v11 }
  0x88   :  { %v78_v14 = vmax.f32 %v76_v13, 0.0 }
  0x89   :  { %v61_v15 = vpop.xlane.xlu0 %60 }
  0x8a   :  { %v80_v16 = vadd.f32 1e-05, %v78_v14  ;;  %v71_v17 = vmul.f32 0.03125, %v61_v15 }
  0x8b   :  { %v69_v18 = vpop.xlane.xlu1 %68 }
  0x8c   :  { %192 = vrsqrt.f32 %v80_v16  ;;  %v75_v19 = vmul.f32 %v71_v17, %v71_v17  ;;  %v73_v21 = vmul.f32 0.03125, %v69_v18  ;;  %vm88_vm3 = vweird.f32 %v80_v16 }
  0x8d   :  { %v103_v47 = vsub.f32 %v307_v3, %v71_v17 }
  0x8e   :  { %v77_v22 = vsub.f32 %v73_v21, %v75_v19 }
  0x90   :  { %v79_v23 = vmax.f32 %v77_v22, 0.0 }
  0x92   :  { %v193_v24 = vpop.eup %192  ;;  %v81_v26 = vadd.f32 1e-05, %v79_v23 }
  0x93   :  { %v83_v25 = vmul.f32 %v193_v24, %v80_v16  ;;  %vm89_vm2 = vweird.f32 %v193_v24 }
  0x94   :  { %194 = vrsqrt.f32 %v81_v26  ;;  %vm90_vm4 = vmor %vm88_vm3, %vm89_vm2  ;;  %vm98_vm6 = vweird.f32 %v81_v26 }
  0x95   :  { %v84_v27 = vmul.f32 %v193_v24, %v83_v25 }
  0x97   :  { %v85_v28 = vmul.f32 0.5, %v84_v27 }
  0x99   :  { %v86_v29 = vsub.f32 1.5, %v85_v28 }
  0x9a   :  { %v195_v32 = vpop.eup %194 }
  0x9b   :  { %v87_v33 = vmul.f32 %v193_v24, %v86_v29  ;;  %v93_v36 = vmul.f32 %v195_v32, %v81_v26  ;;  %vm99_vm5 = vweird.f32 %v195_v32 }
  0x9c   :  { %vm100_vm7 = vmor %vm98_vm6, %vm99_vm5 }
  0x9d   :  { %v91_v37 = vsel %vm90_vm4, %v193_v24, %v87_v33  ;;  %v94_v40 = vmul.f32 %v195_v32, %v93_v36 }
  0x9e   :  { %v104_v39 = vmul.f32 %v102_v35, %v91_v37 }
  0x9f   :  { %v95_v42 = vmul.f32 0.5, %v94_v40 }
  0xa0   :  { %v107_v41 = vsel %vm55_vm0, %v104_v39, 0.0 }
  0xa1   :  { %v108_v43 = vrot.slane %v107_v41, 4  ;;  %v96_v44 = vsub.f32 1.5, %v95_v42 }
  0xa3   :  { %v109_v45 = vadd.f32 %v108_v43, %v107_v41  ;;  %v97_v46 = vmul.f32 %v195_v32, %v96_v44 }
  0xa5   :  { %v101_v48 = vsel %vm100_vm7, %v195_v32, %v97_v46  ;;  %v110_v50 = vrot.slane %v109_v45, 2 }
  0xa6   :  { %v105_v49 = vmul.f32 %v103_v47, %v101_v48 }
  0xa7   :  { %v111_v53 = vadd.f32 %v110_v50, %v109_v45 }
  0xa8   :  { %v114_v51 = vsel %vm55_vm0, %v105_v49, 0.0 }
  0xa9   :  { %v115_v52 = vrot.slane %v114_v51, 4  ;;  %v112_v56 = vrot.slane %v111_v53, 1 }
  0xab   :  { %v116_v54 = vadd.f32 %v115_v52, %v114_v51  ;;  %v113_v59 = vadd.f32 %v112_v56, %v111_v53 }
  0xad   :  { %v117_v55 = vrot.slane %v116_v54, 2 }
  0xaf   :  { %v118_v57 = vadd.f32 %v117_v55, %v116_v54 }
  0xb1   :  { %v119_v58 = vrot.slane %v118_v57, 1 }
  0xb3   :  { %v120_v61 = vadd.f32 %v119_v58, %v118_v57 }
  0xb5   :  { %v124_v62 = vsel %vm123_vm8, %v120_v61, %v113_v59 }
  0xb6   :  { %v126_v63 = vadd.f32 %v124_v62, %v106_v60 }
  0xb8   :  { %128 = vst.msk [vmem:[#allocation2] sm:$0x3] %vm51_vm1, %v126_v63 }
  0xbf   :  { %v132_v0 = vld [vmem:[#allocation2] sm:$0x3] }
  0xc0   :  { %v133_v1 = vmul.f32 0.125, %v132_v0 }
  0xc2   :  { %184 = vmatmul.msk.f32.vlgmr.msra.gmra.mxu0 %vm55_vm0, %v133_v1 }
 0x13f   :  { %v162_v3 = vpop.f32.mrf.mxu0 }
 0x140   :  { %v163_v4 = vadd.f32 %v191_v2, %v162_v3 }
 0x142   :  { %165 = vst [vmem:[#allocation8] sm:$0x3] %v163_v4 }
 0x143   :  { %176 = dma.vmem_to_hbm [thread:$0]  %s172_s25, 32, %s174_s28, [#allocation5]  }
 0x144   :  { %272 = dma.done.wait [#allocation5], 32  }
 0x145   :  { %273 = vsyncadd [#allocation5], 4294967264 }
 0x146   :  { %181 = vsyncpa [#allocation4], 1 }
 0x147   :  { %182 = vsyncpa [#allocation7], 1 }
 0x148   :  { %183 = vsyncpa [#allocation5], 1 }

// kernel: tpu_custom_call.1
= control target key start
LH: loop header
LB: loop body
LE: loop exit
PB: predicated region body
PF: predicated region fallthrough
CT: control target
= control target key end

     0   :  { %8 = vsyncpa [#allocation4], 0  ;;  %s327_s0 = inlined_call_operand.hbm [shape: f32[2,8,32], index: 0, kind: input, shape index: {}]   ;;  %s328_s1 = inlined_call_operand.hbm [shape: f32[32,128], index: 1, kind: input, shape index: {}]   ;;  %s329_s2 = inlined_call_operand.vmem [shape: f32[1,128], index: 2, kind: input, shape index: {}]   ;;  %s330_s3 = inlined_call_operand.hbm [shape: f32[2,128], index: 3, kind: output, shape index: {}]  }
   0x1   :  { %9 = vsyncpa [#allocation7], 0 }
   0x2   :  { %10 = vsyncpa [#allocation5], 0  ;;  %s15_s14 = sshll.u32 %s327_s0, 4  ;;  %s274_s15 = smov [#allocation3]   ;;  %s16_s14 = int_to_ptr.hbm [resolvable:$true] %s15_s14 }
   0x3   :  { %s17_s16 = sshll.u32 %s274_s15, 4  ;;  %s28_s19 = sshll.u32 %s328_s1, 4  ;;  %s18_s16 = int_to_ptr.vmem [resolvable:$true] %s17_s16  ;;  %s29_s19 = int_to_ptr.hbm [resolvable:$true] %s28_s19 }
   0x4   :  { %s275_s20 = smov 128   ;;  %s276_s21 = smov 8  }
   0x5   :  { %23 = dma.hbm_to_vmem [thread:$0]  %s16_s14, 256, %s18_s16, [#allocation4], %s275_s20, %s275_s20, %s276_s21  }
   0x6   :  { %s277_s22 = smov [#allocation6]  }
   0x7   :  { %s30_s23 = sshll.u32 %s277_s22, 4  ;;  %s31_s23 = int_to_ptr.vmem [resolvable:$true] %s30_s23 }
   0x8   :  { %36 = dma.hbm_to_vmem [thread:$0]  %s29_s19, 512, %s31_s23, [#allocation7], %s275_s20, %s275_s20, %s276_s21  }
   0x9   :  { %268 = dma.done.wait [#allocation4], 256  }
   0xa   :  { %269 = vsyncadd [#allocation4], 4294967040 }
   0xb   :  { %270 = dma.done.wait [#allocation7], 512  }
   0xc   :  { %271 = vsyncadd [#allocation7], 4294966784  ;;  %vm55_vm0 = vcmask 261120   ;;  %v53_v0 = vld [vmem:[#allocation3] sm:$0xff]  ;;  %v307_v3 = vld [vmem:[#allocation3 + $0x8] sm:$0xff]  ;;  %vm51_vm1 = vcmask 254976  }
   0xd   :  { %v56_v1 = vsel %vm55_vm0, %v53_v0, 0.0  ;;  %v62_v2 = vmul.f32 %v53_v0, %v53_v0  ;;  %v63_v5 = vmul.f32 %v307_v3, %v307_v3  ;;  %v59_v6 = vsel %vm55_vm0, %v307_v3, 0.0  ;;  %v137_v30 = vld [vmem:[#allocation6 + $0x18] sm:$0xff]  ;;  %v136_v31 = vld [vmem:[#allocation6 + $0x10] sm:$0xff]  ;;  %v135_v34 = vld [vmem:[#allocation6 + $0x8] sm:$0xff]  ;;  %s279_s24 = smov [#allocation8]  }
   0xe   :  { %57 = vadd.xlane.f32.xlu0 %v56_v1  ;;  %v278_v20 = vmov 0.0   ;;  %157 = vmatpush.msra.mxu0 %v137_v30  ;;  %v134_v38 = vld [vmem:[#allocation6] sm:$0xff]  ;;  %vm123_vm8 = vcmask 1041409   ;;  %s171_s25 = sshll.u32 %s279_s24, 4  ;;  %s173_s28 = sshll.u32 %s330_s3, 4  ;;  %s172_s25 = int_to_ptr.vmem [resolvable:$true] %s171_s25  ;;  %s174_s28 = int_to_ptr.hbm [resolvable:$true] %s173_s28 }
   0xf   :  { %v64_v4 = vsel %vm55_vm0, %v62_v2, 0.0  ;;  %v67_v7 = vsel %vm55_vm0, %v63_v5, 0.0  ;;  %52 = vst.msk [vmem:[#allocation2] sm:$0x3] %vm51_vm1, %v278_v20  ;;  %v191_v2 = vld [vmem:[%s329_s2] ss:$0 sm:$0xff] }
  0x10   :  { %65 = vadd.xlane.f32.xlu1 %v64_v4  ;;  %158 = vmatpush.msra.mxu0 %v136_v31 }
  0x12   :  { %159 = vmatpush.msra.mxu0 %v135_v34 }
  0x14   :  { %160 = vmatpush.msra.mxu0 %v134_v38 }
  0x16   :  { %60 = vadd.xlane.f32.xlu0 %v59_v6  ;;  %v106_v60 = vld [vmem:[#allocation2] sm:$0x3] }
  0x18   :  { %68 = vadd.xlane.f32.xlu1 %v67_v7 }
  0x81   :  { %v58_v8 = vpop.xlane.xlu0 %57 }
  0x82   :  { %v70_v9 = vmul.f32 0.03125, %v58_v8 }
  0x83   :  { %v66_v10 = vpop.xlane.xlu1 %65 }
  0x84   :  { %v74_v11 = vmul.f32 %v70_v9, %v70_v9  ;;  %v72_v12 = vmul.f32 0.03125, %v66_v10  ;;  %v102_v35 = vsub.f32 %v53_v0, %v70_v9 }
  0x86   :  { %v76_v13 = vsub.f32 %v72_v12, %v74_v11 }
  0x88   :  { %v78_v14 = vmax.f32 %v76_v13, 0.0 }
  0x89   :  { %v61_v15 = vpop.xlane.xlu0 %60 }
  0x8a   :  { %v80_v16 = vadd.f32 1e-05, %v78_v14  ;;  %v71_v17 = vmul.f32 0.03125, %v61_v15 }
  0x8b   :  { %v69_v18 = vpop.xlane.xlu1 %68 }
  0x8c   :  { %192 = vrsqrt.f32 %v80_v16  ;;  %v75_v19 = vmul.f32 %v71_v17, %v71_v17  ;;  %v73_v21 = vmul.f32 0.03125, %v69_v18  ;;  %vm88_vm3 = vweird.f32 %v80_v16 }
  0x8d   :  { %v103_v47 = vsub.f32 %v307_v3, %v71_v17 }
  0x8e   :  { %v77_v22 = vsub.f32 %v73_v21, %v75_v19 }
  0x90   :  { %v79_v23 = vmax.f32 %v77_v22, 0.0 }
  0x92   :  { %v193_v24 = vpop.eup %192  ;;  %v81_v26 = vadd.f32 1e-05, %v79_v23 }
  0x93   :  { %v83_v25 = vmul.f32 %v193_v24, %v80_v16  ;;  %vm89_vm2 = vweird.f32 %v193_v24 }
  0x94   :  { %194 = vrsqrt.f32 %v81_v26  ;;  %vm90_vm4 = vmor %vm88_vm3, %vm89_vm2  ;;  %vm98_vm6 = vweird.f32 %v81_v26 }
  0x95   :  { %v84_v27 = vmul.f32 %v193_v24, %v83_v25 }
  0x97   :  { %v85_v28 = vmul.f32 0.5, %v84_v27 }
  0x99   :  { %v86_v29 = vsub.f32 1.5, %v85_v28 }
  0x9a   :  { %v195_v32 = vpop.eup %194 }
  0x9b   :  { %v87_v33 = vmul.f32 %v193_v24, %v86_v29  ;;  %v93_v36 = vmul.f32 %v195_v32, %v81_v26  ;;  %vm99_vm5 = vweird.f32 %v195_v32 }
  0x9c   :  { %vm100_vm7 = vmor %vm98_vm6, %vm99_vm5 }
  0x9d   :  { %v91_v37 = vsel %vm90_vm4, %v193_v24, %v87_v33  ;;  %v94_v40 = vmul.f32 %v195_v32, %v93_v36 }
  0x9e   :  { %v104_v39 = vmul.f32 %v102_v35, %v91_v37 }
  0x9f   :  { %v95_v42 = vmul.f32 0.5, %v94_v40 }
  0xa0   :  { %v107_v41 = vsel %vm55_vm0, %v104_v39, 0.0 }
  0xa1   :  { %v108_v43 = vrot.slane %v107_v41, 4  ;;  %v96_v44 = vsub.f32 1.5, %v95_v42 }
  0xa3   :  { %v109_v45 = vadd.f32 %v108_v43, %v107_v41  ;;  %v97_v46 = vmul.f32 %v195_v32, %v96_v44 }
  0xa5   :  { %v101_v48 = vsel %vm100_vm7, %v195_v32, %v97_v46  ;;  %v110_v50 = vrot.slane %v109_v45, 2 }
  0xa6   :  { %v105_v49 = vmul.f32 %v103_v47, %v101_v48 }
  0xa7   :  { %v111_v53 = vadd.f32 %v110_v50, %v109_v45 }
  0xa8   :  { %v114_v51 = vsel %vm55_vm0, %v105_v49, 0.0 }
  0xa9   :  { %v115_v52 = vrot.slane %v114_v51, 4  ;;  %v112_v56 = vrot.slane %v111_v53, 1 }
  0xab   :  { %v116_v54 = vadd.f32 %v115_v52, %v114_v51  ;;  %v113_v59 = vadd.f32 %v112_v56, %v111_v53 }
  0xad   :  { %v117_v55 = vrot.slane %v116_v54, 2 }
  0xaf   :  { %v118_v57 = vadd.f32 %v117_v55, %v116_v54 }
  0xb1   :  { %v119_v58 = vrot.slane %v118_v57, 1 }
  0xb3   :  { %v120_v61 = vadd.f32 %v119_v58, %v118_v57 }
  0xb5   :  { %v124_v62 = vsel %vm123_vm8, %v120_v61, %v113_v59 }
  0xb6   :  { %v126_v63 = vadd.f32 %v124_v62, %v106_v60 }
  0xb8   :  { %128 = vst.msk [vmem:[#allocation2] sm:$0x3] %vm51_vm1, %v126_v63 }
  0xbf   :  { %v132_v0 = vld [vmem:[#allocation2] sm:$0x3] }
  0xc0   :  { %v133_v1 = vmul.f32 0.125, %v132_v0 }
  0xc2   :  { %184 = vmatmul.msk.f32.vlgmr.msra.gmra.mxu0 %vm55_vm0, %v133_v1 }
 0x13f   :  { %v162_v3 = vpop.f32.mrf.mxu0 }
 0x140   :  { %v163_v4 = vadd.f32 %v191_v2, %v162_v3 }
 0x142   :  { %165 = vst [vmem:[#allocation8] sm:$0x3] %v163_v4 }
 0x143   :  { %176 = dma.vmem_to_hbm [thread:$0]  %s172_s25, 32, %s174_s28, [#allocation5]  }
 0x144   :  { %272 = dma.done.wait [#allocation5], 32  }
 0x145   :  { %273 = vsyncadd [#allocation5], 4294967264 }
 0x146   :  { %181 = vsyncpa [#allocation4], 1 }
 0x147   :  { %182 = vsyncpa [#allocation7], 1 }
 0x148   :  { %183 = vsyncpa [#allocation5], 1 }

</bundles_post_ra>
